<compile_context>
chip_gen: v7x
topology: tpu7x:2x2x1
jax: 0.10.0
libtpu: 0.0.40
codegen_flags: <defaults>
</compile_context>

<pallas_src>
import functools
import math

import jax
import jax.numpy as jnp
from jax.experimental import pallas as pl
from jax.experimental.pallas import tpu as pltpu


def _tv_kernel_flat(x_ref, out_ref, *, w, n):
    """Lane-dense path: x_ref is a (tbc, H*W) tile of flattened image slices.

    Writes one f32 partial sum (reduced over the whole tile) to a (1, 1) SMEM block.
    """
    i = pl.program_id(0)
    x = x_ref[...].astype(jnp.float32)                     # (tbc, HW)
    tbc, hw = x.shape

    # Zero out sublanes past the true slice count: the ragged last block reads
    # unspecified data; jnp.where keeps NaN/Inf garbage from propagating.
    slice_idx = i * tbc + jax.lax.broadcasted_iota(jnp.int32, (tbc, 1), 0)
    x = jnp.where(slice_idx < n, x, 0.0)

    col = jax.lax.broadcasted_iota(jnp.int32, (1, hw), 1)
    # x[h, w] - x[h, w-1]   (no left neighbour at w == 0)
    dw = jnp.where(col % w == 0, 0.0, x - pltpu.roll(x, 1, axis=1))
    # x[h, w] - x[h-1, w]   (no upper neighbour at h == 0)
    dh = jnp.where(col < w, 0.0, x - pltpu.roll(x, w, axis=1))

    out_ref[0, 0] = jnp.sum(dw * dw + dh * dh)


def _tv_kernel_rows(x_ref, halo_ref, out_ref, *, th, h):
    """H-tiled path for large slices: x_ref is a (1, th, W) tile of one image slice,
    halo_ref a (1, 8, W) block whose last row is the row just above this tile."""
    j = pl.program_id(1)
    x = x_ref[...].astype(jnp.float32)                     # (1, th, W)
    up = halo_ref[:, 7:8, :].astype(jnp.float32)           # (1, 1, W)

    rit = jax.lax.broadcasted_iota(jnp.int32, x.shape, 1)  # row within tile
    col = jax.lax.broadcasted_iota(jnp.int32, x.shape, 2)  # column
    row = j * th + rit                                     # global row index

    x = jnp.where(row < h, x, 0.0)                         # ragged last H block

    # x[h, w] - x[h, w-1]
    dw = jnp.where(col == 0, 0.0, x - pltpu.roll(x, 1, axis=2))
    # x[h, w] - x[h-1, w]: in-tile rows via sublane roll, tile row 0 via the halo.
    x_up = pltpu.roll(x, 1, axis=1)
    x_up = jnp.where(rit == 0, up, x_up)
    dh = jnp.where((row >= 1) & (row < h), x - x_up, 0.0)

    out_ref[0, 0] = jnp.sum(dw * dw + dh * dh)


def _default_block_bytes():
    # ~2 MiB already saturates v5e's ~0.8 TB/s HBM; v6e wants 2-4 MiB; v7x's
    # ~3.2 TB/s per TC needs ~8 MiB blocks to amortise the ~0.35 us per-step cost.
    try:
        kind = jax.devices()[0].device_kind.lower()
    except Exception:
        return 4 << 20
    if "v5 lite" in kind or "v5e" in kind:
        return 2 << 20
    if "v6" in kind:
        return 4 << 20
    if "v7" in kind or "7x" in kind:
        return 8 << 20
    return 4 << 20


def total_variation_loss(x, *, target_block_bytes=None):
    """x: (..., H, W) array (any float dtype). Returns the scalar f32 TV loss."""
    if target_block_bytes is None:
        target_block_bytes = _default_block_bytes()

    *lead, H, W = x.shape
    N = int(math.prod(lead)) if lead else 1
    HW = H * W
    itemsize = jnp.dtype(x.dtype).itemsize
    slice_bytes = HW * itemsize
    min_tbc = 8 if N >= 8 else N            # smallest legal sublane block for this N

    use_row_tiling = (min_tbc * slice_bytes > target_block_bytes) and (H >= 16)

    if not use_row_tiling:
        # ---- Path A: flatten each (b, c) slice to a lane-dense row of length H*W.
        x_flat = x.reshape(N, HW)
        if N <= 8:
            tbc = N                          # single block covering the full array
        else:
            tbc = max(8, (int(target_block_bytes // slice_bytes) // 8) * 8)
            tbc = min(tbc, (N // 8) * 8)
            if pl.cdiv(N, tbc) == 1 and N >= 16:
                # Keep >=2 blocks so the "parallel" axis can shard across both
                # v7x TensorCores (and the pipeline has something to overlap).
                tbc = max(8, (((N + 1) // 2 + 7) // 8) * 8)
        nb = pl.cdiv(N, tbc)

        partials = pl.pallas_call(
            functools.partial(_tv_kernel_flat, w=W, n=N),
            out_shape=jax.ShapeDtypeStruct((nb, 1), jnp.float32),
            grid_spec=pltpu.PrefetchScalarGridSpec(
                num_scalar_prefetch=0,
                grid=(nb,),
                in_specs=[pl.BlockSpec((tbc, HW), lambda i: (i, 0))],
                out_specs=pl.BlockSpec(
                    (1, 1), lambda i: (i, 0),
                    memory_space=pltpu.MemorySpace.SMEM),
            ),
            compiler_params=pltpu.CompilerParams(
                dimension_semantics=("parallel",)),
        )(x_flat)
    else:
        # ---- Path B: one slice per block, tiled along H with a one-row halo so a
        # single huge image never forces an 8*H*W-sized block into VMEM.
        # TODO(synk): also tile along W when a single image row exceeds the budget.
        x3 = x.reshape(N, H, W)
        row_bytes = W * itemsize
        th = max(8, (int(target_block_bytes // row_bytes) // 8) * 8)
        th = min(th, (H // 8) * 8)
        nb, hb = N, pl.cdiv(H, th)
        th_blocks = th // 8                  # halo index stride in 8-row blocks

        partials = pl.pallas_call(
            functools.partial(_tv_kernel_rows, th=th, h=H),
            out_shape=jax.ShapeDtypeStruct((nb, hb), jnp.float32),
            grid_spec=pltpu.PrefetchScalarGridSpec(
                num_scalar_prefetch=0,
                grid=(nb, hb),
                in_specs=[
                    pl.BlockSpec((1, th, W), lambda i, j: (i, j, 0)),
                    # Aligned 8-row window ending just above this tile; only its last
                    # row is used (j == 0 is clamped and masked out in-kernel).
                    pl.BlockSpec(
                        (1, 8, W),
                        lambda i, j: (i, jnp.maximum(j * th_blocks - 1, 0), 0)),
                ],
                out_specs=pl.BlockSpec(
                    (1, 1), lambda i, j: (i, j),
                    memory_space=pltpu.MemorySpace.SMEM),
            ),
            compiler_params=pltpu.CompilerParams(
                dimension_semantics=("parallel", "parallel")),
        )(x3, x3)

    return jnp.sum(partials) / jnp.float32(x.size)


def _reference_tv_loss(x):
    x = x.astype(jnp.float32)
    h = jnp.sum((x[..., 1:, :] - x[..., :-1, :]) ** 2)
    v = jnp.sum((x[..., 1:] - x[..., :-1]) ** 2)
    return (h + v) / x.size


if __name__ == "__main__":
    key = jax.random.PRNGKey(0)
    k1, k2, k3 = jax.random.split(key, 3)

    # 1) Main case: lane-dense flattened path, N == 8 (exactly one full block).
    x1 = jax.random.normal(k1, (2, 4, 16, 16), dtype=jnp.float32)
    out1 = jax.block_until_ready(total_variation_loss(x1))
    ref1 = _reference_tv_loss(x1)
    assert jnp.allclose(out1, ref1, rtol=1e-5, atol=1e-5), (out1, ref1)

    # 2) Ragged-N case (N=12, tbc=8 -> last block partially valid, no jnp.pad).
    x2 = jax.random.normal(k2, (3, 4, 16, 16), dtype=jnp.float32)
    out2 = jax.block_until_ready(total_variation_loss(x2))
    ref2 = _reference_tv_loss(x2)
    assert jnp.allclose(out2, ref2, rtol=1e-5, atol=1e-5), (out2, ref2)

    # 3) H-tiled path with halo + ragged H (forced via a tiny block budget).
    x3 = jax.random.normal(k3, (1, 1, 40, 16), dtype=jnp.float32)
    out3 = jax.block_until_ready(total_variation_loss(x3, target_block_bytes=1024))
    ref3 = _reference_tv_loss(x3)
    assert jnp.allclose(out3, ref3, rtol=1e-5, atol=1e-5), (out3, ref3)

    print("KERNEL_OK")
</pallas_src>

<mosaic_0001>
module attributes {stable_mosaic.version = 11 : i64} {
  func.func @_tv_kernel_flat(%arg0: i32, %arg1: memref<8x256xf32, #tpu.memory_space<vmem>>, %arg2: memref<1x1xf32, #tpu.memory_space<smem>>) attributes {dimension_semantics = [#tpu.dimension_semantics<parallel>], iteration_bounds = array<i64: 1>, scalar_prefetch = 0 : i64, scratch_operands = 0 : i64, tpu.core_type = #tpu.core_type<tc>, window_params = [{transform_indices = @transform_0, window_bounds = array<i64: 8, 256>}, {transform_indices = @transform_1, window_bounds = array<i64: 1, 1>}]} {
    %c0 = arith.constant 0 : index
    %c0_0 = arith.constant 0 : index
    %0 = vector.load %arg1[%c0, %c0_0] : memref<8x256xf32, #tpu.memory_space<vmem>>, vector<8x256xf32>
    %c8_i32 = arith.constant 8 : i32
    %1 = arith.muli %arg0, %c8_i32 : i32
    %2 = tpu.iota {dimensions = array<i32: 0>} : vector<8x1xi32>
    %3 = vector.broadcast %1 : i32 to vector<8x1xi32>
    %4 = arith.addi %3, %2 : vector<8x1xi32>
    %c8_i32_1 = arith.constant 8 : i32
    %5 = vector.broadcast %c8_i32_1 : i32 to vector<8x1xi32>
    %6 = arith.cmpi slt, %4, %5 : vector<8x1xi32>
    %cst = arith.constant 0.000000e+00 : f32
    %7 = vector.shape_cast %6 : vector<8x1xi1> to vector<8x1xi1>
    %8 = vector.broadcast %7 : vector<8x1xi1> to vector<8x256xi1>
    %9 = vector.broadcast %cst : f32 to vector<8x256xf32>
    %10 = arith.select %8, %0, %9 : vector<8x256xi1>, vector<8x256xf32>
    %11 = tpu.iota {dimensions = array<i32: 1>} : vector<1x256xi32>
    %c16_i32 = arith.constant 16 : i32
    %c0_i32 = arith.constant 0 : i32
    %12 = arith.cmpi eq, %c16_i32, %c0_i32 : i32
    %c1_i32 = arith.constant 1 : i32
    %13 = arith.select %12, %c1_i32, %c16_i32 : i32
    %14 = vector.broadcast %13 : i32 to vector<1x256xi32>
    %15 = arith.remsi %11, %14 : vector<1x256xi32>
    %c0_i32_2 = arith.constant 0 : i32
    %16 = vector.broadcast %c0_i32_2 : i32 to vector<1x256xi32>
    %17 = arith.cmpi ne, %15, %16 : vector<1x256xi32>
    %c0_i32_3 = arith.constant 0 : i32
    %18 = vector.broadcast %c0_i32_3 : i32 to vector<1x256xi32>
    %19 = arith.cmpi slt, %15, %18 : vector<1x256xi32>
    %c0_i32_4 = arith.constant 0 : i32
    %20 = arith.cmpi slt, %13, %c0_i32_4 : i32
    %21 = vector.broadcast %20 : i1 to vector<1x256xi1>
    %22 = vector.broadcast %21 : vector<1x256xi1> to vector<1x256xi1>
    %23 = arith.xori %19, %22 : vector<1x256xi1>
    %24 = arith.andi %23, %17 : vector<1x256xi1>
    %25 = vector.broadcast %13 : i32 to vector<1x256xi32>
    %26 = arith.addi %15, %25 : vector<1x256xi32>
    %27 = arith.select %24, %26, %15 : vector<1x256xi1>, vector<1x256xi32>
    %c0_i32_5 = arith.constant 0 : i32
    %28 = vector.broadcast %c0_i32_5 : i32 to vector<1x256xi32>
    %29 = arith.cmpi eq, %27, %28 : vector<1x256xi32>
    %c1_i32_6 = arith.constant 1 : i32
    %30 = tpu.dynamic_rotate %10 by %c1_i32_6 dim 1 : vector<8x256xf32>, i32 -> vector<8x256xf32>
    %31 = arith.subf %10, %30 : vector<8x256xf32>
    %cst_7 = arith.constant 0.000000e+00 : f32
    %32 = vector.shape_cast %29 : vector<1x256xi1> to vector<1x256xi1>
    %33 = vector.broadcast %32 : vector<1x256xi1> to vector<8x256xi1>
    %34 = vector.broadcast %cst_7 : f32 to vector<8x256xf32>
    %35 = arith.select %33, %34, %31 : vector<8x256xi1>, vector<8x256xf32>
    %c16_i32_8 = arith.constant 16 : i32
    %36 = vector.broadcast %c16_i32_8 : i32 to vector<1x256xi32>
    %37 = arith.cmpi slt, %11, %36 : vector<1x256xi32>
    %c16_i32_9 = arith.constant 16 : i32
    %38 = tpu.dynamic_rotate %10 by %c16_i32_9 dim 1 : vector<8x256xf32>, i32 -> vector<8x256xf32>
    %39 = arith.subf %10, %38 : vector<8x256xf32>
    %cst_10 = arith.constant 0.000000e+00 : f32
    %40 = vector.shape_cast %37 : vector<1x256xi1> to vector<1x256xi1>
    %41 = vector.broadcast %40 : vector<1x256xi1> to vector<8x256xi1>
    %42 = vector.broadcast %cst_10 : f32 to vector<8x256xf32>
    %43 = arith.select %41, %42, %39 : vector<8x256xi1>, vector<8x256xf32>
    %44 = arith.mulf %35, %35 : vector<8x256xf32>
    %45 = arith.mulf %43, %43 : vector<8x256xf32>
    %46 = arith.addf %44, %45 : vector<8x256xf32>
    %47 = vector.shape_cast %46 : vector<8x256xf32> to vector<1x8x256xf32>
    %cst_11 = arith.constant dense<0.000000e+00> : vector<1xf32>
    %48 = vector.multi_reduction <add>, %47, %cst_11 [1, 2] : vector<1x8x256xf32> to vector<1xf32>
    %49 = vector.shape_cast %48 : vector<1xf32> to vector<1x1x1xf32>
    %50 = vector.extract %49[0, 0, 0] : f32 from vector<1x1x1xf32>
    %c0_12 = arith.constant 0 : index
    %c0_13 = arith.constant 0 : index
    %51 = memref.load %arg2[%c0_12, %c0_13] : memref<1x1xf32, #tpu.memory_space<smem>>
    memref.store %50, %arg2[%c0_12, %c0_13] : memref<1x1xf32, #tpu.memory_space<smem>>
    return
  }
  func.func @transform_0(%arg0: i32) -> (i32, i32) {
    %c0_i32 = arith.constant 0 : i32
    %c0_i32_0 = arith.constant 0 : i32
    return %arg0, %c0_i32 : i32, i32
  }
  func.func @transform_1(%arg0: i32) -> (i32, i32) {
    %c0_i32 = arith.constant 0 : i32
    %c0_i32_0 = arith.constant 0 : i32
    return %arg0, %c0_i32 : i32, i32
  }
}

</mosaic_0001>

<bundles_post_ra>
// kernel: tpu_custom_call.1
= control target key start
LH: loop header
LB: loop body
LE: loop exit
PB: predicated region body
PF: predicated region fallthrough
CT: control target
= control target key end

     0   :  { %6 = vsyncpa [#allocation3], 0  ;;  %s205_s0 = inlined_call_operand.hbm [shape: f32[8,256], index: 0, kind: input, shape index: {}]   ;;  %s206_s1 = inlined_call_operand.hbm [shape: f32[1,1], index: 1, kind: output, shape index: {}]  }
   0x1   :  { %7 = vsyncpa [#allocation4], 0  ;;  %s167_s6 = smov [#allocation2]   ;;  %s131_s10 = scalar_lea.hbm %s205_s0, 256 }
   0x2   :  { %s14_s7 = sshll.u32 %s167_s6, 4  ;;  %p132_p0 = scmp.ne.s32.totalorder %s205_s0, %s131_s10  ;;  %s15_s7 = int_to_ptr.vmem [resolvable:$true] %s14_s7 }
   0x3   :  { %p135_p1 = scmp.lt.u32.totalorder %s131_s10, %s205_s0 }
   0x5   :  { %p137_p2 = pnand %p135_p1, %p132_p0 }
   0x7   :  { %140 = shalt.err (!%p137_p2)
}
   0x8   :  { %s141_s15 = scalar_lea.vmem %s15_s7, 256  ;;  %p146_p4 = scmp.lt.s32.totalorder %s15_s7, %s15_s7 }
   0x9   :  { %p142_p3 = scmp.ne.s32.totalorder %s15_s7, %s141_s15  ;;  %p147_p5 = scmp.lt.s32.totalorder %s141_s15, %s141_s15 }
   0xb   :  { %p148_p6 = por %p147_p5, %p146_p4 }
   0xd   :  { %p149_p7 = pnand %p148_p6, %p142_p3 }
   0xf   :  { %152 = shalt.err (!%p149_p7)
}
  0x10   :  { %17 = dma.hbm_to_vmem [thread:$0]  %s205_s0, 256, %s15_s7, [#allocation3]  }
  0x11   :  { %163 = dma.done.wait [#allocation3], 256  }
  0x12   :  { %164 = vsyncadd [#allocation3], 4294967040  ;;  %v21_v0 = vld [vmem:[#allocation2] sm:$0xff]  ;;  %s168_s18 = smov 16   ;;  %s169_s19 = smov 1   ;;  %v22_v1 = vld [vmem:[#allocation2 + $0x8] sm:$0xff]  ;;  %v33_v2 = vlaneseq }
  0x13   :  { %79 = vrot.lane.b32.xlu1 %v21_v0, %s168_s18  ;;  %62 = vrot.lane.b32.xlu0 %v21_v0, %s169_s19  ;;  %s153_s22 = scalar_lea.hbm %s206_s1, 16 }
  0x14   :  { %v34_v3 = vand.u32 127, %v33_v2  ;;  %p154_p8 = scmp.ne.s32.totalorder %s206_s1, %s153_s22  ;;  %p157_p9 = scmp.lt.u32.totalorder %s153_s22, %s206_s1 }
  0x16   :  { %v35_v4 = vadd.s32 128, %v34_v3  ;;  %v40_v7 = vand.u32 15, %v34_v3  ;;  %vm77_vm0 = vcmp.lt.s32.totalorder %v34_v3, 16  ;;  %vm66_vm1 = vcmp.lt.s32.totalorder %v34_v3, 1  ;;  %p159_p10 = pnand %p157_p9, %p154_p8 }
  0x17   :  { %81 = vrot.lane.b32.xlu1 %v22_v1, %s168_s18  ;;  %64 = vrot.lane.b32.xlu0 %v22_v1, %s169_s19 }
  0x18   :  { %v47_v8 = vand.u32 15, %v35_v4  ;;  %vm60_vm2 = vcmp.eq.s32.totalorder %v40_v7, 0 }
  0x1a   :  { %vm61_vm3 = vcmp.eq.s32.totalorder %v47_v8, 0 }
  0x85   :  { %v80_v5 = vpop.permute.xlu1 %79  ;;  %v63_v6 = vpop.permute.xlu0 %62 }
  0x89   :  { %v82_v9 = vpop.permute.xlu1 %81  ;;  %v65_v10 = vpop.permute.xlu0 %64 }
  0x8a   :  { %v83_v11 = vsel %vm77_vm0, %v80_v5, %v82_v9  ;;  %v84_v12 = vsel %vm77_vm0, %v82_v9, %v80_v5  ;;  %v67_v13 = vsel %vm66_vm1, %v63_v6, %v65_v10  ;;  %v68_v14 = vsel %vm66_vm1, %v65_v10, %v63_v6 }
  0x8b   :  { %v85_v15 = vsub.f32 %v21_v0, %v84_v12  ;;  %v86_v16 = vsub.f32 %v22_v1, %v83_v11  ;;  %v69_v17 = vsub.f32 %v21_v0, %v68_v14  ;;  %v70_v18 = vsub.f32 %v22_v1, %v67_v13 }
  0x8d   :  { %v91_v19 = vsel %vm77_vm0, 0.0, %v85_v15  ;;  %v96_v20 = vmul.f32 %v86_v16, %v86_v16  ;;  %v75_v21 = vsel %vm60_vm2, 0.0, %v69_v17  ;;  %v76_v22 = vsel %vm61_vm3, 0.0, %v70_v18 }
  0x8e   :  { %v95_v23 = vmul.f32 %v91_v19, %v91_v19  ;;  %v93_v24 = vmul.f32 %v75_v21, %v75_v21  ;;  %v94_v25 = vmul.f32 %v76_v22, %v76_v22 }
  0x90   :  { %v97_v26 = vadd.f32 %v95_v23, %v93_v24  ;;  %v98_v27 = vadd.f32 %v96_v20, %v94_v25 }
  0x92   :  { %v99_v28 = vadd.f32 %v98_v27, %v97_v26 }
  0x94   :  { %100 = vadd.xlane.f32.xlu0 %v99_v28 }
 0x121   :  { %v101_v29 = vpop.xlane.xlu0 %100 }
 0x122   :  { %v102_v30 = vrot.slane %v101_v29, 4 }
 0x124   :  { %v103_v31 = vadd.f32 %v102_v30, %v101_v29 }
 0x126   :  { %v104_v32 = vrot.slane %v103_v31, 2 }
 0x128   :  { %v105_v33 = vadd.f32 %v104_v32, %v103_v31 }
 0x12a   :  { %v106_v34 = vrot.slane %v105_v33, 1 }
 0x12c   :  { %v107_v35 = vadd.f32 %v106_v34, %v105_v33 }
 0x12e   :  { %125 = vpush %v107_v35 }
 0x15f   :  { %s126_s0 = spop %125 }
 0x160   :  { %110 = sst [smem:[#allocation5]] %s126_s0 }
 0x161   :  { %162 = shalt.err (!%p159_p10)
}
 0x162   :  { %s170_s27 = smov [#allocation5]  }
 0x163   :  { %118 = dma.smem_to_hbm %s170_s27, 16, %s206_s1, [#allocation4]  }
 0x164   :  { %165 = dma.done.wait [#allocation4], 16  }
 0x165   :  { %166 = vsyncadd [#allocation4], 4294967280 }
 0x166   :  { %122 = sfence }
 0x167   :  { %123 = vsyncpa [#allocation3], 1 }
 0x168   :  { %124 = vsyncpa [#allocation4], 1 }

</bundles_post_ra>
